<compile_context>
chip_gen: v6e
topology: v6e:2x2x1
jax: 0.10.0
libtpu: 0.0.40
codegen_flags: <defaults>
</compile_context>

<pallas_src>
import functools

import jax
import jax.numpy as jnp
import numpy as np
from jax.experimental import pallas as pl
from jax.experimental.pallas import tpu as pltpu

# ---------------- configuration (small, deterministic) ----------------
B = 2            # batch
T = 16           # sequence length
C = 64           # nb_filters (module default; input channels == nb_filters)
NUM_DIL = 3      # self.dilations -> blocks with dilation 1, 2, 4
KSIZE = 2        # kernel_size (kernel assumes == 2, the module default)
BN_EPS = 1e-3


# ---------------- Pallas kernel ----------------
def timnet_kernel(x_ref, wp_ref, wc_ref, vec_ref, o_ref, *,
                  num_dil, seq_len, nb_filters, batch):
    """Whole TIMNET forward in one invocation.

    x_ref   : (B*T, 2C) f32   lanes = [forward x | time-reversed x]
    wp_ref  : (2C, 2C) bf16   block-diagonal [forward_convd | backward_convd]
    wc_ref  : (num_dil*2, 2*2C, 2C) bf16
              per-conv tap-fused block-diagonal weights, BN scale folded;
              index = j*2 + conv_idx
    vec_ref : (1+num_dil*2, 2C) f32
              row 0 = pointwise bias; row 1+j*2+ci = conv bias*scale + shift
    o_ref   : (num_dil, B, 2C) f32  per-dilation per-batch time sums (fwd|bwd)
    """
    Tn = seq_len
    Cn = nb_filters
    C2 = 2 * Cn
    BT = batch * Tn
    bf16 = jnp.bfloat16
    f32 = jnp.float32

    # --- pointwise convs: both directions in one lane-dense matmul ---
    x = x_ref[...]                                              # (BT, 2C) f32
    skip = (jnp.dot(x.astype(bf16), wp_ref[...],
                    preferred_element_type=f32)
            + vec_ref[0:1, :])                                  # (BT, 2C) f32

    # time index within each batch segment (for the causal zero-padding mask)
    row_t = jax.lax.broadcasted_iota(jnp.int32, (BT, C2), 0) % Tn

    for j in range(num_dil):                                    # static unroll
        d = 2 ** j
        keep = row_t >= d                                       # rows with valid t-d
        h = skip
        # NOTE: assumes kernel_size == 2 (two taps) and d < T (asserted in wrapper).
        for ci in range(2):                                     # conv->bn->relu twice
            vidx = 1 + j * 2 + ci
            rolled = pltpu.roll(h, shift=d, axis=0)             # h[t-d] (XLU slot)
            shifted = jnp.where(keep, rolled, 0.0)              # causal zero pad
            # Fuse the two taps into one K=256 matmul (fills v6e/v7x MXU depth).
            act = jnp.concatenate([shifted, h], axis=1).astype(bf16)   # (BT, 4C)
            y = (jnp.dot(act, wc_ref[j * 2 + ci],
                         preferred_element_type=f32)
                 + vec_ref[vidx:vidx + 1, :])                   # folded bias + BN
            h = jnp.maximum(y, 0.0)                             # ReLU (Dropout = id)

        gated = jax.nn.sigmoid(h) * skip                        # TemporalBlock output
        # Time pooling: per-batch sublane reduction (no MXU traffic).
        rows = [jnp.sum(gated[b * Tn:(b + 1) * Tn, :], axis=0, keepdims=True)
                for b in range(batch)]
        o_ref[j] = jnp.concatenate(rows, axis=0)                # (B, 2C) lane-dense


# ---------------- wrapper ----------------
def timnet_forward(x, params):
    """x: (B, T, C) float32.  Returns (B, C, num_dil) matching PyTorch."""
    Bn, Tn, Cn = x.shape
    BT = Bn * Tn
    assert KSIZE == 2, "kernel assumes kernel_size == 2"
    assert 2 ** (NUM_DIL - 1) < Tn, "dilation must stay below sequence length"

    # Pack forward and time-reversed copies side-by-side on the lane axis.
    x_packed = jnp.concatenate(
        [x.reshape(BT, Cn), x[:, ::-1, :].reshape(BT, Cn)], axis=-1)   # (BT, 2C)

    kernel = functools.partial(timnet_kernel, num_dil=NUM_DIL, seq_len=Tn,
                               nb_filters=Cn, batch=Bn)

    out = pl.pallas_call(
        kernel,
        out_shape=jax.ShapeDtypeStruct((NUM_DIL, Bn, 2 * Cn), jnp.float32),
        in_specs=[
            pl.BlockSpec(memory_space=pltpu.MemorySpace.VMEM),   # x_packed
            pl.BlockSpec(memory_space=pltpu.MemorySpace.VMEM),   # wp_packed
            pl.BlockSpec(memory_space=pltpu.MemorySpace.VMEM),   # wc_packed
            pl.BlockSpec(memory_space=pltpu.MemorySpace.VMEM),   # vec_packed
        ],
        out_specs=pl.BlockSpec(memory_space=pltpu.MemorySpace.VMEM),
    )(x_packed, params["wp_packed"], params["wc_packed"], params["vec_packed"])

    # Average forward/backward time sums over the concatenated 2T axis and go
    # to the torch output layout (B, C, num_dil).
    pooled = (out[..., :Cn] + out[..., Cn:]) * (1.0 / (2.0 * Tn))  # (num_dil, B, C)
    return jnp.transpose(pooled, (1, 2, 0))


# ---------------- deterministic parameter construction & packing ----------------
def make_params(key):
    ks = jax.random.split(key, 8)
    # pointwise convs (forward_convd / backward_convd), stored as (C_in, C_out)
    wp = jax.random.normal(ks[0], (2, C, C), jnp.float32) * 0.05
    bp = jax.random.normal(ks[1], (2, C), jnp.float32) * 0.05
    # dilated conv weights: (dil, dir, conv_idx, tap, C_in, C_out), N(0, 0.01)
    wc = jax.random.normal(ks[2], (NUM_DIL, 2, 2, KSIZE, C, C), jnp.float32) * 0.01
    bc = jax.random.normal(ks[3], (NUM_DIL, 2, 2, C), jnp.float32) * 0.05
    # BatchNorm params
    # TODO(synk): training-mode BatchNorm (batch statistics) not implemented;
    #             eval-mode running stats are folded into the conv weights.
    gamma = 1.0 + 0.1 * jax.random.normal(ks[4], (NUM_DIL, 2, 2, C), jnp.float32)
    beta = 0.1 * jax.random.normal(ks[5], (NUM_DIL, 2, 2, C), jnp.float32)
    rmean = 0.05 * jax.random.normal(ks[6], (NUM_DIL, 2, 2, C), jnp.float32)
    rvar = 1.0 + 0.1 * jax.nn.softplus(
        jax.random.normal(ks[7], (NUM_DIL, 2, 2, C), jnp.float32))
    bn_scale = gamma / jnp.sqrt(rvar + BN_EPS)
    bn_shift = beta - rmean * bn_scale

    # ---- kernel packing: directions on lanes, BN folded, taps fused, bf16 MXU ----
    zero = jnp.zeros((C, C), jnp.float32)

    def blockdiag(a, b):                                     # (2C, 2C)
        return jnp.concatenate(
            [jnp.concatenate([a, zero], axis=1),
             jnp.concatenate([zero, b], axis=1)], axis=0)

    wp_packed = blockdiag(wp[0], wp[1]).astype(jnp.bfloat16)   # (2C, 2C)

    wc_rows = []
    vec_rows = [jnp.concatenate([bp[0], bp[1]], axis=0)]       # row 0: pointwise bias
    for j in range(NUM_DIL):
        for ci in range(2):
            sf = bn_scale[j, 0, ci]
            sb = bn_scale[j, 1, ci]
            taps = []
            for tap in range(KSIZE):
                wf = wc[j, 0, ci, tap] * sf[None, :]
                wb = wc[j, 1, ci, tap] * sb[None, :]
                taps.append(blockdiag(wf, wb))                 # (2C, 2C)
            wc_rows.append(jnp.concatenate(taps, axis=0))      # (KSIZE*2C, 2C)
            bias_f = bc[j, 0, ci] * sf + bn_shift[j, 0, ci]
            bias_b = bc[j, 1, ci] * sb + bn_shift[j, 1, ci]
            vec_rows.append(jnp.concatenate([bias_f, bias_b], axis=0))
    wc_packed = jnp.stack(wc_rows).astype(jnp.bfloat16)        # (NUM_DIL*2, 4C, 2C)
    vec_packed = jnp.stack(vec_rows)                           # (1+NUM_DIL*2, 2C) f32

    return {
        "wp": wp, "bp": bp, "wc": wc, "bc": bc,
        "bn_scale": bn_scale, "bn_shift": bn_shift,
        "wp_packed": wp_packed, "wc_packed": wc_packed, "vec_packed": vec_packed,
    }


# ---------------- pure-JAX reference (mirrors the torch forward) ----------------
def timnet_reference(x, p):
    """PyTorch-structured eval-mode forward (flip, pad+chomp, folded BN), with the
    same bf16 matmul operands / f32 accumulation as the kernel."""
    Bn, Tn, Cn = x.shape
    bf16 = jnp.bfloat16
    xf, xb = x, x[:, ::-1, :]

    def pointwise(z, w, b):
        return jnp.einsum('btc,cd->btd', z.astype(bf16), w.astype(bf16),
                          preferred_element_type=jnp.float32) + b

    skip_f = pointwise(xf, p["wp"][0], p["bp"][0])
    skip_b = pointwise(xb, p["wp"][1], p["bp"][1])

    def block(skip, j, dirn):
        d = 2 ** j
        h = skip
        for ci in range(2):
            scale = p["bn_scale"][j, dirn, ci]
            shift = p["bn_shift"][j, dirn, ci]
            w0 = (p["wc"][j, dirn, ci, 0] * scale[None, :]).astype(bf16)
            w1 = (p["wc"][j, dirn, ci, 1] * scale[None, :]).astype(bf16)
            bias = p["bc"][j, dirn, ci] * scale + shift
            shifted = jnp.concatenate(
                [jnp.zeros((Bn, d, Cn), h.dtype), h[:, :Tn - d, :]], axis=1)
            y = (jnp.einsum('btc,cd->btd', shifted.astype(bf16), w0,
                            preferred_element_type=jnp.float32)
                 + jnp.einsum('btc,cd->btd', h.astype(bf16), w1,
                              preferred_element_type=jnp.float32)
                 + bias)
            h = jnp.maximum(y, 0.0)
        return jax.nn.sigmoid(h) * skip

    outs = []
    for j in range(NUM_DIL):
        x1 = block(skip_f, j, 0)
        x2 = block(skip_b, j, 1)
        pooled = (x1.sum(axis=1) + x2.sum(axis=1)) / (2.0 * Tn)   # (B, C)
        outs.append(pooled[:, None, :])
    out = jnp.concatenate(outs, axis=1)            # (B, num_dil, C)
    return jnp.transpose(out, (0, 2, 1))           # (B, C, num_dil)


if __name__ == "__main__":
    key = jax.random.PRNGKey(0)
    k_x, k_p = jax.random.split(key)
    x = jax.random.normal(k_x, (B, T, C), jnp.float32)   # (batch, seq, nb_filters)
    params = make_params(k_p)

    out = jax.block_until_ready(timnet_forward(x, params))
    ref = jax.block_until_ready(timnet_reference(x, params))

    assert out.shape == (B, C, NUM_DIL), out.shape
    np.testing.assert_allclose(np.asarray(out), np.asarray(ref),
                               rtol=2e-3, atol=2e-3)
    print("KERNEL_OK")
</pallas_src>

<mosaic_0001>
module attributes {stable_mosaic.version = 11 : i64} {
  func.func @timnet_kernel(%arg0: memref<32x128xf32, #tpu.memory_space<vmem>>, %arg1: memref<128x128xbf16, #tpu.memory_space<vmem>>, %arg2: memref<6x256x128xbf16, #tpu.memory_space<vmem>>, %arg3: memref<7x128xf32, #tpu.memory_space<vmem>>, %arg4: memref<3x2x128xf32, #tpu.memory_space<vmem>>) attributes {dimension_semantics = [], scalar_prefetch = 0 : i64, scratch_operands = 0 : i64, tpu.core_type = #tpu.core_type<tc>} {
    %c0 = arith.constant 0 : index
    %c0_0 = arith.constant 0 : index
    %0 = vector.load %arg0[%c0, %c0_0] : memref<32x128xf32, #tpu.memory_space<vmem>>, vector<32x128xf32>
    %1 = arith.truncf %0 : vector<32x128xf32> to vector<32x128xbf16>
    %c0_1 = arith.constant 0 : index
    %c0_2 = arith.constant 0 : index
    %2 = vector.load %arg1[%c0_1, %c0_2] : memref<128x128xbf16, #tpu.memory_space<vmem>>, vector<128x128xbf16>
    %cst = arith.constant dense<0.000000e+00> : vector<32x128xf32>
    %3 = tpu.matmul %1, %2, %cst {dimension_numbers = #tpu.dot_dimension_numbers<[1], [0], [0], [1], [0, 0, 1, 1], [], []>} : vector<32x128xbf16>, vector<128x128xbf16>, vector<32x128xf32> -> vector<32x128xf32>
    %c0_3 = arith.constant 0 : index
    %c0_4 = arith.constant 0 : index
    %4 = vector.load %arg3[%c0_3, %c0_4] : memref<7x128xf32, #tpu.memory_space<vmem>>, vector<1x128xf32>
    %5 = vector.broadcast %4 : vector<1x128xf32> to vector<32x128xf32>
    %6 = arith.addf %3, %5 : vector<32x128xf32>
    %7 = tpu.iota {dimensions = array<i32: 0>} : vector<32x128xi32>
    %c16_i32 = arith.constant 16 : i32
    %c0_i32 = arith.constant 0 : i32
    %8 = arith.cmpi eq, %c16_i32, %c0_i32 : i32
    %c1_i32 = arith.constant 1 : i32
    %9 = arith.select %8, %c1_i32, %c16_i32 : i32
    %10 = vector.broadcast %9 : i32 to vector<32x128xi32>
    %11 = arith.remsi %7, %10 : vector<32x128xi32>
    %c0_i32_5 = arith.constant 0 : i32
    %12 = vector.broadcast %c0_i32_5 : i32 to vector<32x128xi32>
    %13 = arith.cmpi ne, %11, %12 : vector<32x128xi32>
    %c0_i32_6 = arith.constant 0 : i32
    %14 = vector.broadcast %c0_i32_6 : i32 to vector<32x128xi32>
    %15 = arith.cmpi slt, %11, %14 : vector<32x128xi32>
    %c0_i32_7 = arith.constant 0 : i32
    %16 = arith.cmpi slt, %9, %c0_i32_7 : i32
    %17 = vector.broadcast %16 : i1 to vector<32x128xi1>
    %18 = vector.broadcast %17 : vector<32x128xi1> to vector<32x128xi1>
    %19 = arith.xori %15, %18 : vector<32x128xi1>
    %20 = arith.andi %19, %13 : vector<32x128xi1>
    %21 = vector.broadcast %9 : i32 to vector<32x128xi32>
    %22 = arith.addi %11, %21 : vector<32x128xi32>
    %23 = arith.select %20, %22, %11 : vector<32x128xi1>, vector<32x128xi32>
    %c1_i32_8 = arith.constant 1 : i32
    %24 = vector.broadcast %c1_i32_8 : i32 to vector<32x128xi32>
    %25 = arith.cmpi sge, %23, %24 : vector<32x128xi32>
    %c1_i32_9 = arith.constant 1 : i32
    %26 = tpu.dynamic_rotate %6 by %c1_i32_9 dim 0 : vector<32x128xf32>, i32 -> vector<32x128xf32>
    %cst_10 = arith.constant 0.000000e+00 : f32
    %27 = vector.broadcast %cst_10 : f32 to vector<32x128xf32>
    %28 = arith.select %25, %26, %27 : vector<32x128xi1>, vector<32x128xf32>
    %29 = tpu.concatenate %28, %6 in 1 : vector<32x128xf32>, vector<32x128xf32> -> vector<32x256xf32>
    %30 = arith.truncf %29 : vector<32x256xf32> to vector<32x256xbf16>
    %c0_11 = arith.constant 0 : index
    %c0_12 = arith.constant 0 : index
    %c0_13 = arith.constant 0 : index
    %31 = vector.load %arg2[%c0_11, %c0_12, %c0_13] : memref<6x256x128xbf16, #tpu.memory_space<vmem>>, vector<1x256x128xbf16>
    %32 = vector.shape_cast %31 : vector<1x256x128xbf16> to vector<256x128xbf16>
    %cst_14 = arith.constant dense<0.000000e+00> : vector<32x128xf32>
    %33 = tpu.matmul %30, %32, %cst_14 {dimension_numbers = #tpu.dot_dimension_numbers<[1], [0], [0], [1], [0, 0, 1, 1], [], []>} : vector<32x256xbf16>, vector<256x128xbf16>, vector<32x128xf32> -> vector<32x128xf32>
    %c1 = arith.constant 1 : index
    %c0_15 = arith.constant 0 : index
    %34 = vector.load %arg3[%c1, %c0_15] : memref<7x128xf32, #tpu.memory_space<vmem>>, vector<1x128xf32>
    %35 = vector.broadcast %34 : vector<1x128xf32> to vector<32x128xf32>
    %36 = arith.addf %33, %35 : vector<32x128xf32>
    %cst_16 = arith.constant 0.000000e+00 : f32
    %37 = vector.broadcast %cst_16 : f32 to vector<32x128xf32>
    %38 = arith.maximumf %36, %37 : vector<32x128xf32>
    %c1_i32_17 = arith.constant 1 : i32
    %39 = tpu.dynamic_rotate %38 by %c1_i32_17 dim 0 : vector<32x128xf32>, i32 -> vector<32x128xf32>
    %cst_18 = arith.constant 0.000000e+00 : f32
    %40 = vector.broadcast %cst_18 : f32 to vector<32x128xf32>
    %41 = arith.select %25, %39, %40 : vector<32x128xi1>, vector<32x128xf32>
    %42 = tpu.concatenate %41, %38 in 1 : vector<32x128xf32>, vector<32x128xf32> -> vector<32x256xf32>
    %43 = arith.truncf %42 : vector<32x256xf32> to vector<32x256xbf16>
    %c1_19 = arith.constant 1 : index
    %c0_20 = arith.constant 0 : index
    %c0_21 = arith.constant 0 : index
    %44 = vector.load %arg2[%c1_19, %c0_20, %c0_21] : memref<6x256x128xbf16, #tpu.memory_space<vmem>>, vector<1x256x128xbf16>
    %45 = vector.shape_cast %44 : vector<1x256x128xbf16> to vector<256x128xbf16>
    %cst_22 = arith.constant dense<0.000000e+00> : vector<32x128xf32>
    %46 = tpu.matmul %43, %45, %cst_22 {dimension_numbers = #tpu.dot_dimension_numbers<[1], [0], [0], [1], [0, 0, 1, 1], [], []>} : vector<32x256xbf16>, vector<256x128xbf16>, vector<32x128xf32> -> vector<32x128xf32>
    %c2 = arith.constant 2 : index
    %c0_23 = arith.constant 0 : index
    %47 = vector.load %arg3[%c2, %c0_23] : memref<7x128xf32, #tpu.memory_space<vmem>>, vector<1x128xf32>
    %48 = vector.broadcast %47 : vector<1x128xf32> to vector<32x128xf32>
    %49 = arith.addf %46, %48 : vector<32x128xf32>
    %cst_24 = arith.constant 0.000000e+00 : f32
    %50 = vector.broadcast %cst_24 : f32 to vector<32x128xf32>
    %51 = arith.maximumf %49, %50 : vector<32x128xf32>
    %52 = arith.negf %51 : vector<32x128xf32>
    %53 = math.exp %52 : vector<32x128xf32>
    %cst_25 = arith.constant 1.000000e+00 : f32
    %54 = vector.broadcast %cst_25 : f32 to vector<32x128xf32>
    %55 = arith.addf %54, %53 : vector<32x128xf32>
    %56 = arith.divf %54, %55 : vector<32x128xf32>
    %57 = arith.mulf %56, %6 : vector<32x128xf32>
    %58 = vector.extract_strided_slice %57 {offsets = [0, 0], sizes = [16, 128], strides = [1, 1]} : vector<32x128xf32> to vector<16x128xf32>
    %cst_26 = arith.constant dense<0.000000e+00> : vector<128xf32>
    %59 = vector.multi_reduction <add>, %58, %cst_26 [0] : vector<16x128xf32> to vector<128xf32>
    %60 = vector.shape_cast %59 : vector<128xf32> to vector<1x128xf32>
    %61 = vector.extract_strided_slice %57 {offsets = [16, 0], sizes = [16, 128], strides = [1, 1]} : vector<32x128xf32> to vector<16x128xf32>
    %cst_27 = arith.constant dense<0.000000e+00> : vector<128xf32>
    %62 = vector.multi_reduction <add>, %61, %cst_27 [0] : vector<16x128xf32> to vector<128xf32>
    %63 = vector.shape_cast %62 : vector<128xf32> to vector<1x128xf32>
    %64 = tpu.concatenate %60, %63 in 0 : vector<1x128xf32>, vector<1x128xf32> -> vector<2x128xf32>
    %c0_28 = arith.constant 0 : index
    %c0_29 = arith.constant 0 : index
    %c0_30 = arith.constant 0 : index
    %65 = vector.load %arg4[%c0_28, %c0_29, %c0_30] : memref<3x2x128xf32, #tpu.memory_space<vmem>>, vector<1x2x128xf32>
    %66 = vector.shape_cast %65 : vector<1x2x128xf32> to vector<2x128xf32>
    %67 = vector.shape_cast %64 : vector<2x128xf32> to vector<1x2x128xf32>
    tpu.vector_store %arg4[%c0_28, %c0_29, %c0_30], %67 {strides = array<i32>} : memref<3x2x128xf32, #tpu.memory_space<vmem>>, vector<1x2x128xf32>,
    %c2_i32 = arith.constant 2 : i32
    %68 = vector.broadcast %c2_i32 : i32 to vector<32x128xi32>
    %69 = arith.cmpi sge, %23, %68 : vector<32x128xi32>
    %c2_i32_31 = arith.constant 2 : i32
    %70 = tpu.dynamic_rotate %6 by %c2_i32_31 dim 0 : vector<32x128xf32>, i32 -> vector<32x128xf32>
    %cst_32 = arith.constant 0.000000e+00 : f32
    %71 = vector.broadcast %cst_32 : f32 to vector<32x128xf32>
    %72 = arith.select %69, %70, %71 : vector<32x128xi1>, vector<32x128xf32>
    %73 = tpu.concatenate %72, %6 in 1 : vector<32x128xf32>, vector<32x128xf32> -> vector<32x256xf32>
    %74 = arith.truncf %73 : vector<32x256xf32> to vector<32x256xbf16>
    %c2_33 = arith.constant 2 : index
    %c0_34 = arith.constant 0 : index
    %c0_35 = arith.constant 0 : index
    %75 = vector.load %arg2[%c2_33, %c0_34, %c0_35] : memref<6x256x128xbf16, #tpu.memory_space<vmem>>, vector<1x256x128xbf16>
    %76 = vector.shape_cast %75 : vector<1x256x128xbf16> to vector<256x128xbf16>
    %cst_36 = arith.constant dense<0.000000e+00> : vector<32x128xf32>
    %77 = tpu.matmul %74, %76, %cst_36 {dimension_numbers = #tpu.dot_dimension_numbers<[1], [0], [0], [1], [0, 0, 1, 1], [], []>} : vector<32x256xbf16>, vector<256x128xbf16>, vector<32x128xf32> -> vector<32x128xf32>
    %c3 = arith.constant 3 : index
    %c0_37 = arith.constant 0 : index
    %78 = vector.load %arg3[%c3, %c0_37] : memref<7x128xf32, #tpu.memory_space<vmem>>, vector<1x128xf32>
    %79 = vector.broadcast %78 : vector<1x128xf32> to vector<32x128xf32>
    %80 = arith.addf %77, %79 : vector<32x128xf32>
    %cst_38 = arith.constant 0.000000e+00 : f32
    %81 = vector.broadcast %cst_38 : f32 to vector<32x128xf32>
    %82 = arith.maximumf %80, %81 : vector<32x128xf32>
    %c2_i32_39 = arith.constant 2 : i32
    %83 = tpu.dynamic_rotate %82 by %c2_i32_39 dim 0 : vector<32x128xf32>, i32 -> vector<32x128xf32>
    %cst_40 = arith.constant 0.000000e+00 : f32
    %84 = vector.broadcast %cst_40 : f32 to vector<32x128xf32>
    %85 = arith.select %69, %83, %84 : vector<32x128xi1>, vector<32x128xf32>
    %86 = tpu.concatenate %85, %82 in 1 : vector<32x128xf32>, vector<32x128xf32> -> vector<32x256xf32>
    %87 = arith.truncf %86 : vector<32x256xf32> to vector<32x256xbf16>
    %c3_41 = arith.constant 3 : index
    %c0_42 = arith.constant 0 : index
    %c0_43 = arith.constant 0 : index
    %88 = vector.load %arg2[%c3_41, %c0_42, %c0_43] : memref<6x256x128xbf16, #tpu.memory_space<vmem>>, vector<1x256x128xbf16>
    %89 = vector.shape_cast %88 : vector<1x256x128xbf16> to vector<256x128xbf16>
    %cst_44 = arith.constant dense<0.000000e+00> : vector<32x128xf32>
    %90 = tpu.matmul %87, %89, %cst_44 {dimension_numbers = #tpu.dot_dimension_numbers<[1], [0], [0], [1], [0, 0, 1, 1], [], []>} : vector<32x256xbf16>, vector<256x128xbf16>, vector<32x128xf32> -> vector<32x128xf32>
    %c4 = arith.constant 4 : index
    %c0_45 = arith.constant 0 : index
    %91 = vector.load %arg3[%c4, %c0_45] : memref<7x128xf32, #tpu.memory_space<vmem>>, vector<1x128xf32>
    %92 = vector.broadcast %91 : vector<1x128xf32> to vector<32x128xf32>
    %93 = arith.addf %90, %92 : vector<32x128xf32>
    %cst_46 = arith.constant 0.000000e+00 : f32
    %94 = vector.broadcast %cst_46 : f32 to vector<32x128xf32>
    %95 = arith.maximumf %93, %94 : vector<32x128xf32>
    %96 = arith.negf %95 : vector<32x128xf32>
    %97 = math.exp %96 : vector<32x128xf32>
    %cst_47 = arith.constant 1.000000e+00 : f32
    %98 = vector.broadcast %cst_47 : f32 to vector<32x128xf32>
    %99 = arith.addf %98, %97 : vector<32x128xf32>
    %100 = arith.divf %98, %99 : vector<32x128xf32>
    %101 = arith.mulf %100, %6 : vector<32x128xf32>
    %102 = vector.extract_strided_slice %101 {offsets = [0, 0], sizes = [16, 128], strides = [1, 1]} : vector<32x128xf32> to vector<16x128xf32>
    %cst_48 = arith.constant dense<0.000000e+00> : vector<128xf32>
    %103 = vector.multi_reduction <add>, %102, %cst_48 [0] : vector<16x128xf32> to vector<128xf32>
    %104 = vector.shape_cast %103 : vector<128xf32> to vector<1x128xf32>
    %105 = vector.extract_strided_slice %101 {offsets = [16, 0], sizes = [16, 128], strides = [1, 1]} : vector<32x128xf32> to vector<16x128xf32>
    %cst_49 = arith.constant dense<0.000000e+00> : vector<128xf32>
    %106 = vector.multi_reduction <add>, %105, %cst_49 [0] : vector<16x128xf32> to vector<128xf32>
    %107 = vector.shape_cast %106 : vector<128xf32> to vector<1x128xf32>
    %108 = tpu.concatenate %104, %107 in 0 : vector<1x128xf32>, vector<1x128xf32> -> vector<2x128xf32>
    %c1_50 = arith.constant 1 : index
    %c0_51 = arith.constant 0 : index
    %c0_52 = arith.constant 0 : index
    %109 = vector.load %arg4[%c1_50, %c0_51, %c0_52] : memref<3x2x128xf32, #tpu.memory_space<vmem>>, vector<1x2x128xf32>
    %110 = vector.shape_cast %109 : vector<1x2x128xf32> to vector<2x128xf32>
    %111 = vector.shape_cast %108 : vector<2x128xf32> to vector<1x2x128xf32>
    tpu.vector_store %arg4[%c1_50, %c0_51, %c0_52], %111 {strides = array<i32>} : memref<3x2x128xf32, #tpu.memory_space<vmem>>, vector<1x2x128xf32>,
    %c4_i32 = arith.constant 4 : i32
    %112 = vector.broadcast %c4_i32 : i32 to vector<32x128xi32>
    %113 = arith.cmpi sge, %23, %112 : vector<32x128xi32>
    %c4_i32_53 = arith.constant 4 : i32
    %114 = tpu.dynamic_rotate %6 by %c4_i32_53 dim 0 : vector<32x128xf32>, i32 -> vector<32x128xf32>
    %cst_54 = arith.constant 0.000000e+00 : f32
    %115 = vector.broadcast %cst_54 : f32 to vector<32x128xf32>
    %116 = arith.select %113, %114, %115 : vector<32x128xi1>, vector<32x128xf32>
    %117 = tpu.concatenate %116, %6 in 1 : vector<32x128xf32>, vector<32x128xf32> -> vector<32x256xf32>
    %118 = arith.truncf %117 : vector<32x256xf32> to vector<32x256xbf16>
    %c4_55 = arith.constant 4 : index
    %c0_56 = arith.constant 0 : index
    %c0_57 = arith.constant 0 : index
    %119 = vector.load %arg2[%c4_55, %c0_56, %c0_57] : memref<6x256x128xbf16, #tpu.memory_space<vmem>>, vector<1x256x128xbf16>
    %120 = vector.shape_cast %119 : vector<1x256x128xbf16> to vector<256x128xbf16>
    %cst_58 = arith.constant dense<0.000000e+00> : vector<32x128xf32>
    %121 = tpu.matmul %118, %120, %cst_58 {dimension_numbers = #tpu.dot_dimension_numbers<[1], [0], [0], [1], [0, 0, 1, 1], [], []>} : vector<32x256xbf16>, vector<256x128xbf16>, vector<32x128xf32> -> vector<32x128xf32>
    %c5 = arith.constant 5 : index
    %c0_59 = arith.constant 0 : index
    %122 = vector.load %arg3[%c5, %c0_59] : memref<7x128xf32, #tpu.memory_space<vmem>>, vector<1x128xf32>
    %123 = vector.broadcast %122 : vector<1x128xf32> to vector<32x128xf32>
    %124 = arith.addf %121, %123 : vector<32x128xf32>
    %cst_60 = arith.constant 0.000000e+00 : f32
    %125 = vector.broadcast %cst_60 : f32 to vector<32x128xf32>
    %126 = arith.maximumf %124, %125 : vector<32x128xf32>
    %c4_i32_61 = arith.constant 4 : i32
    %127 = tpu.dynamic_rotate %126 by %c4_i32_61 dim 0 : vector<32x128xf32>, i32 -> vector<32x128xf32>
    %cst_62 = arith.constant 0.000000e+00 : f32
    %128 = vector.broadcast %cst_62 : f32 to vector<32x128xf32>
    %129 = arith.select %113, %127, %128 : vector<32x128xi1>, vector<32x128xf32>
    %130 = tpu.concatenate %129, %126 in 1 : vector<32x128xf32>, vector<32x128xf32> -> vector<32x256xf32>
    %131 = arith.truncf %130 : vector<32x256xf32> to vector<32x256xbf16>
    %c5_63 = arith.constant 5 : index
    %c0_64 = arith.constant 0 : index
    %c0_65 = arith.constant 0 : index
    %132 = vector.load %arg2[%c5_63, %c0_64, %c0_65] : memref<6x256x128xbf16, #tpu.memory_space<vmem>>, vector<1x256x128xbf16>
    %133 = vector.shape_cast %132 : vector<1x256x128xbf16> to vector<256x128xbf16>
    %cst_66 = arith.constant dense<0.000000e+00> : vector<32x128xf32>
    %134 = tpu.matmul %131, %133, %cst_66 {dimension_numbers = #tpu.dot_dimension_numbers<[1], [0], [0], [1], [0, 0, 1, 1], [], []>} : vector<32x256xbf16>, vector<256x128xbf16>, vector<32x128xf32> -> vector<32x128xf32>
    %c6 = arith.constant 6 : index
    %c0_67 = arith.constant 0 : index
    %135 = vector.load %arg3[%c6, %c0_67] : memref<7x128xf32, #tpu.memory_space<vmem>>, vector<1x128xf32>
    %136 = vector.broadcast %135 : vector<1x128xf32> to vector<32x128xf32>
    %137 = arith.addf %134, %136 : vector<32x128xf32>
    %cst_68 = arith.constant 0.000000e+00 : f32
    %138 = vector.broadcast %cst_68 : f32 to vector<32x128xf32>
    %139 = arith.maximumf %137, %138 : vector<32x128xf32>
    %140 = arith.negf %139 : vector<32x128xf32>
    %141 = math.exp %140 : vector<32x128xf32>
    %cst_69 = arith.constant 1.000000e+00 : f32
    %142 = vector.broadcast %cst_69 : f32 to vector<32x128xf32>
    %143 = arith.addf %142, %141 : vector<32x128xf32>
    %144 = arith.divf %142, %143 : vector<32x128xf32>
    %145 = arith.mulf %144, %6 : vector<32x128xf32>
    %146 = vector.extract_strided_slice %145 {offsets = [0, 0], sizes = [16, 128], strides = [1, 1]} : vector<32x128xf32> to vector<16x128xf32>
    %cst_70 = arith.constant dense<0.000000e+00> : vector<128xf32>
    %147 = vector.multi_reduction <add>, %146, %cst_70 [0] : vector<16x128xf32> to vector<128xf32>
    %148 = vector.shape_cast %147 : vector<128xf32> to vector<1x128xf32>
    %149 = vector.extract_strided_slice %145 {offsets = [16, 0], sizes = [16, 128], strides = [1, 1]} : vector<32x128xf32> to vector<16x128xf32>
    %cst_71 = arith.constant dense<0.000000e+00> : vector<128xf32>
    %150 = vector.multi_reduction <add>, %149, %cst_71 [0] : vector<16x128xf32> to vector<128xf32>
    %151 = vector.shape_cast %150 : vector<128xf32> to vector<1x128xf32>
    %152 = tpu.concatenate %148, %151 in 0 : vector<1x128xf32>, vector<1x128xf32> -> vector<2x128xf32>
    %c2_72 = arith.constant 2 : index
    %c0_73 = arith.constant 0 : index
    %c0_74 = arith.constant 0 : index
    %153 = vector.load %arg4[%c2_72, %c0_73, %c0_74] : memref<3x2x128xf32, #tpu.memory_space<vmem>>, vector<1x2x128xf32>
    %154 = vector.shape_cast %153 : vector<1x2x128xf32> to vector<2x128xf32>
    %155 = vector.shape_cast %152 : vector<2x128xf32> to vector<1x2x128xf32>
    tpu.vector_store %arg4[%c2_72, %c0_73, %c0_74], %155 {strides = array<i32>} : memref<3x2x128xf32, #tpu.memory_space<vmem>>, vector<1x2x128xf32>,
    return
  }
}

</mosaic_0001>

<bundles_post_ra>
// kernel: tpu_custom_call.1
= control target key start
LH: loop header
LB: loop body
LE: loop exit
PB: predicated region body
PF: predicated region fallthrough
CT: control target
= control target key end

     0   :  { %9 = vsyncpa [#allocation3], 0  ;;  %s2566_s0 = inlined_call_operand.hbm [shape: f32[32,128], index: 0, kind: input, shape index: {}]   ;;  %s2567_s1 = inlined_call_operand.hbm [shape: bf16[128,128], index: 1, kind: input, shape index: {}]   ;;  %s2568_s2 = inlined_call_operand.hbm [shape: bf16[6,256,128], index: 2, kind: input, shape index: {}]   ;;  %s2569_s3 = inlined_call_operand.hbm [shape: f32[7,128], index: 3, kind: input, shape index: {}]   ;;  %s2570_s4 = inlined_call_operand.hbm [shape: f32[3,2,128], index: 4, kind: output, shape index: {}]  }
   0x1   :  { %10 = vsyncpa [#allocation6], 0 }
   0x2   :  { %11 = vsyncpa [#allocation9], 0 }
   0x3   :  { %12 = vsyncpa [#allocation4], 0  ;;  %s2276_s15 = smov [#allocation5]  }
   0x4   :  { %s30_s16 = sshll.u32 %s2276_s15, 4  ;;  %s31_s16 = int_to_ptr.vmem [resolvable:$true] %s30_s16 }
   0x5   :  { %s2176_s17 = scalar_lea.vmem %s31_s16, 1024  ;;  %p2181_p1 = scmp.lt.s32.totalorder %s31_s16, %s31_s16 }
   0x6   :  { %p2177_p0 = scmp.ne.s32.totalorder %s31_s16, %s2176_s17  ;;  %p2182_p2 = scmp.lt.s32.totalorder %s2176_s17, %s2176_s17 }
   0x8   :  { %p2183_p3 = por %p2182_p2, %p2181_p1 }
   0xa   :  { %p2184_p4 = pnand %p2183_p3, %p2177_p0 }
   0xc   :  { %2187 = shalt.err (!%p2184_p4)
}
   0xd   :  { %s2277_s18 = smov 64   ;;  %s2278_s19 = smov 4  }
   0xe   :  { %36 = dma.hbm_to_vmem [thread:$0]  %s2567_s1, 1024, %s31_s16, [#allocation6], %s2277_s18, %s2277_s18, %s2278_s19  }
   0xf   :  { %s2279_s22 = smov [#allocation2]  }
  0x10   :  { %s18_s23 = sshll.u32 %s2279_s22, 4  ;;  %s19_s23 = int_to_ptr.vmem [resolvable:$true] %s18_s23 }
  0x11   :  { %s2196_s24 = scalar_lea.vmem %s19_s23, 512  ;;  %p2201_p6 = scmp.lt.s32.totalorder %s19_s23, %s19_s23 }
  0x12   :  { %p2197_p5 = scmp.ne.s32.totalorder %s19_s23, %s2196_s24  ;;  %p2202_p7 = scmp.lt.s32.totalorder %s2196_s24, %s2196_s24 }
  0x14   :  { %p2203_p8 = por %p2202_p7, %p2201_p6 }
  0x16   :  { %p2204_p9 = pnand %p2203_p8, %p2197_p5 }
  0x18   :  { %2207 = shalt.err (!%p2204_p9)
}
  0x19   :  { %s2280_s25 = smov 128   ;;  %s2281_s26 = smov 8  }
  0x1a   :  { %24 = dma.hbm_to_vmem [thread:$0]  %s2566_s0, 512, %s19_s23, [#allocation3], %s2280_s25, %s2280_s25, %s2281_s26  }
  0x1b   :  { %s2282_s29 = smov [#allocation7]   ;;  %s2283_s5 = smov [#allocation8]  }
  0x1c   :  { %s42_s30 = sshll.u32 %s2282_s29, 4  ;;  %s55_s1 = sshll.u32 %s2283_s5, 4  ;;  %s43_s30 = int_to_ptr.vmem [resolvable:$true] %s42_s30  ;;  %s56_s1 = int_to_ptr.vmem [resolvable:$true] %s55_s1 }
  0x1d   :  { %s2216_s6 = scalar_lea.vmem %s43_s30, 12288  ;;  %p2221_p11 = scmp.lt.s32.totalorder %s43_s30, %s43_s30 }
  0x1e   :  { %p2217_p10 = scmp.ne.s32.totalorder %s43_s30, %s2216_s6  ;;  %p2222_p12 = scmp.lt.s32.totalorder %s2216_s6, %s2216_s6 }
  0x20   :  { %p2223_p13 = por %p2222_p12, %p2221_p11 }
  0x22   :  { %p2224_p0 = pnand %p2223_p13, %p2217_p10 }
  0x24   :  { %2227 = shalt.err (!%p2224_p0)
}
  0x25   :  { %48 = dma.hbm_to_vmem [thread:$0]  %s2568_s2, 12288, %s43_s30, [#allocation6], %s2277_s18, %s2277_s18, %s2278_s19  }
  0x26   :  { %s2236_s0 = scalar_lea.vmem %s56_s1, 128  ;;  %p2241_p2 = scmp.lt.s32.totalorder %s56_s1, %s56_s1 }
  0x27   :  { %p2237_p1 = scmp.ne.s32.totalorder %s56_s1, %s2236_s0  ;;  %p2242_p3 = scmp.lt.s32.totalorder %s2236_s0, %s2236_s0 }
  0x29   :  { %p2243_p4 = por %p2242_p3, %p2241_p2 }
  0x2b   :  { %p2244_p5 = pnand %p2243_p4, %p2237_p1 }
  0x2d   :  { %2247 = shalt.err (!%p2244_p5)
}
  0x2e   :  { %58 = dma.hbm_to_vmem [thread:$0]  %s2569_s3, 128, %s56_s1, [#allocation9]  }
  0x2f   :  { %2268 = dma.done.wait [#allocation3], 512  }
  0x30   :  { %2269 = vsyncadd [#allocation3], 4294966784 }
  0x31   :  { %2270 = dma.done.wait [#allocation6], 13312  }
  0x32   :  { %2271 = vsyncadd [#allocation6], 4294953984 }
  0x33   :  { %2272 = dma.done.wait [#allocation9], 128  }
  0x34   :  { %2273 = vsyncadd [#allocation9], 4294967168  ;;  %v2016_v0 = vld [vmem:[#allocation5 + $0x38] sm:$0xff]   ;;  %v2017_v1 = vld [vmem:[#allocation5 + $0x30] sm:$0xff]   ;;  %v196_v35 = vlaneseq  ;;  %vm2284_vm2 = vmmov 1   ;;  %s2285_s2 = smov [#allocation10]  }
  0x35   :  { %1968 = vmatprep.subr.bf16.mxu0 %v2016_v0  ;;  %v2018_v2 = vld [vmem:[#allocation5 + $0x28] sm:$0xff]   ;;  %v2019_v3 = vld [vmem:[#allocation5 + $0x20] sm:$0xff]   ;;  %v2020_v7 = vld [vmem:[#allocation5 + $0x18] sm:$0xff]   ;;  %s1617_s3 = sshll.u32 %s2285_s2, 4  ;;  %s1618_s3 = int_to_ptr.vmem [resolvable:$true] %s1617_s3 }
  0x36   :  { %1969 = vmatpush3.bf16.msra.mxu0 %v2016_v0  ;;  %v72_v4 = vld [vmem:[#allocation2] sm:$0xff]  ;;  %v73_v5 = vld [vmem:[#allocation2 + $0x8] sm:$0xff]  ;;  %v2024_v8 = vld [vmem:[#allocation7 + $0x78] sm:$0xff]   ;;  %v2331_v38 = vshrl.u32 %v196_v35, 7  ;;  %s2248_s11 = scalar_lea.vmem %s1618_s3, 96  ;;  %p2253_p7 = scmp.lt.s32.totalorder %s1618_s3, %s1618_s3 }
  0x37   :  { %1970 = vmatprep.subr.bf16.mxu0 %v2017_v1  ;;  %v76_v6 = vpack.c.bf16 %v73_v5, %v72_v4  ;;  %v2025_v9 = vld [vmem:[#allocation7 + $0x38] sm:$0xff]   ;;  %1800 = vmatprep.subr.bf16.mxu1 %v2024_v8  ;;  %v2026_v10 = vld [vmem:[#allocation7 + $0x70] sm:$0xff]   ;;  %v2028_v12 = vld [vmem:[#allocation7 + $0x68] sm:$0xff]   ;;  %p2249_p6 = scmp.ne.s32.totalorder %s1618_s3, %s2248_s11  ;;  %p2254_p8 = scmp.lt.s32.totalorder %s2248_s11, %s2248_s11 }
  0x38   :  { %1801 = vmatpush3.bf16.msra.mxu1 %v2025_v9  ;;  %v2027_v11 = vld [vmem:[#allocation7 + $0x30] sm:$0xff]   ;;  %v2029_v14 = vld [vmem:[#allocation7 + $0x28] sm:$0xff]   ;;  %v2030_v16 = vld [vmem:[#allocation7 + $0x60] sm:$0xff]   ;;  %v2334_v41 = vand.u32 15, %v2331_v38  ;;  %vm257_vm1 = vcmp.lt.s32.totalorder %v2331_v38, 1  ;;  %v199_v47 = vadd.s32 16, %v2331_v38 }
  0x39   :  { %1984 = vmatprep.mubr.bf16.mxu0 %v76_v6  ;;  %1802 = vmatprep.subr.bf16.mxu1 %v2026_v10  ;;  %v2021_v13 = vld [vmem:[#allocation5 + $0x10] sm:$0xff]   ;;  %v2022_v15 = vld [vmem:[#allocation5 + $0x8] sm:$0xff]   ;;  %v2031_v17 = vld [vmem:[#allocation7 + $0x20] sm:$0xff]   ;;  %vm712_vm6 = vcmp.lt.s32.totalorder %v2331_v38, 2  ;;  %vm1166_vm11 = vcmp.lt.s32.totalorder %v2331_v38, 4  ;;  %p2255_p9 = por %p2254_p8, %p2253_p7 }
  0x3a   :  { %1971 = vmatpush3.bf16.msra.mxu0 %v2017_v1  ;;  %v2032_v18 = vld [vmem:[#allocation7 + $0x58] sm:$0xff]   ;;  %v2023_v19 = vld [vmem:[#allocation5] sm:$0xff]   ;;  %v74_v21 = vld [vmem:[#allocation2 + $0x10] sm:$0xff]  ;;  %vm249_vm0 = vcmp.ge.s32.totalorder %v2334_v41, 1  ;;  %v2364_v58 = vand.u32 15, %v199_v47  ;;  %vm704_vm7 = vcmp.ge.s32.totalorder %v2334_v41, 2 }
  0x3b   :  { %1972 = vmatprep.subr.bf16.mxu0 %v2018_v2  ;;  %v2033_v20 = vld [vmem:[#allocation7 + $0x18] sm:$0xff]   ;;  %v2034_v24 = vld [vmem:[#allocation7 + $0x50] sm:$0xff]   ;;  %v2036_v26 = vld [vmem:[#allocation7 + $0x48] sm:$0xff]   ;;  %vm1158_vm12 = vcmp.ge.s32.totalorder %v2334_v41, 4  ;;  %p2256_p10 = pnand %p2255_p9, %p2249_p6 }
  0x3c   :  { %1803 = vmatpush3.bf16.msra.mxu1 %v2027_v11  ;;  %v75_v22 = vld [vmem:[#allocation2 + $0x18] sm:$0xff]  ;;  %v2035_v25 = vld [vmem:[#allocation7 + $0x10] sm:$0xff]   ;;  %v2037_v27 = vld [vmem:[#allocation7 + $0x8] sm:$0xff]   ;;  %vm251_vm4 = vcmp.ge.s32.totalorder %v2364_v58, 1  ;;  %vm706_vm9 = vcmp.ge.s32.totalorder %v2364_v58, 2  ;;  %vm1160_vm14 = vcmp.ge.s32.totalorder %v2364_v58, 4 }
  0x3d   :  { %1804 = vmatprep.subr.bf16.mxu1 %v2028_v12  ;;  %v77_v23 = vpack.c.bf16 %v75_v22, %v74_v21  ;;  %v2038_v28 = vld [vmem:[#allocation7 + $0x40] sm:$0xff]   ;;  %v2040_v30 = vld [vmem:[#allocation7 + $0x178] sm:$0xff]   ;;  %v2074_v33 = vld [vmem:[#allocation7 + $0xf0] sm:$0xff]  }
  0x3e   :  { %1973 = vmatpush3.bf16.msra.mxu0 %v2018_v2  ;;  %v2039_v29 = vld [vmem:[#allocation7] sm:$0xff]   ;;  %v2072_v31 = vld [vmem:[#allocation7 + $0xf8] sm:$0xff]   ;;  %v2075_v34 = vld [vmem:[#allocation7 + $0xb0] sm:$0xff]  }
  0x3f   :  { %1974 = vmatprep.subr.bf16.mxu0 %v2019_v3  ;;  %v2073_v32 = vld [vmem:[#allocation7 + $0xb8] sm:$0xff]   ;;  %v1631_v39 = vld [vmem:[#allocation8] ss:$0 sm:$0xff]  ;;  %vm2360_vm3 = vmpackc.low %vm2284_vm2, %vm249_vm0  ;;  %vm701_vm0 = vcmask 1040384  }
  0x40   :  { %1805 = vmatpush3.bf16.msra.mxu1 %v2029_v14  ;;  %v2041_v55 = vld [vmem:[#allocation7 + $0x138] sm:$0xff]   ;;  %v2042_v57 = vld [vmem:[#allocation7 + $0x170] sm:$0xff]   ;;  %v2044_v62 = vld [vmem:[#allocation7 + $0x168] sm:$0xff]  }
  0x41   :  { %1806 = vmatprep.subr.bf16.mxu1 %v2030_v16  ;;  %v2043_v60 = vld [vmem:[#allocation7 + $0x130] sm:$0xff]   ;;  %vm2380_vm5 = vmpackc.low %vm2284_vm2, %vm251_vm4  ;;  %v2045_v2 = vld [vmem:[#allocation7 + $0x128] sm:$0xff]  }
  0x42   :  { %1975 = vmatpush3.bf16.msra.mxu0 %v2019_v3  ;;  %v2046_v4 = vld [vmem:[#allocation7 + $0x160] sm:$0xff]   ;;  %v2048_v6 = vld [vmem:[#allocation7 + $0x158] sm:$0xff]   ;;  %v2050_v8 = vld [vmem:[#allocation7 + $0x150] sm:$0xff]  }
  0x43   :  { %1976 = vmatprep.subr.bf16.mxu0 %v2020_v7  ;;  %v2047_v5 = vld [vmem:[#allocation7 + $0x120] sm:$0xff]   ;;  %v2051_v9 = vld [vmem:[#allocation7 + $0x110] sm:$0xff]   ;;  %v2052_v10 = vld [vmem:[#allocation7 + $0x148] sm:$0xff]  }
  0x44   :  { %1807 = vmatpush3.bf16.msra.mxu1 %v2031_v17  ;;  %v2053_v11 = vld [vmem:[#allocation7 + $0x108] sm:$0xff]   ;;  %v2054_v12 = vld [vmem:[#allocation7 + $0x140] sm:$0xff]   ;;  %v2056_v17 = vld [vmem:[#allocation7 + $0x278] sm:$0xff]  }
  0x45   :  { %1808 = vmatprep.subr.bf16.mxu1 %v2032_v18  ;;  %v2055_v14 = vld [vmem:[#allocation7 + $0x100] sm:$0xff]   ;;  %vm2397_vm8 = vmpackc.low %vm2284_vm2, %vm704_vm7  ;;  %v2057_v21 = vld [vmem:[#allocation7 + $0x238] sm:$0xff]  }
  0x46   :  { %1977 = vmatpush3.bf16.msra.mxu0 %v2020_v7  ;;  %v2049_v7 = vld [vmem:[#allocation7 + $0x118] sm:$0xff]   ;;  %vm2411_vm10 = vmpackc.low %vm2284_vm2, %vm706_vm9  ;;  %v2071_v47 = vld [vmem:[#allocation7 + $0x200] sm:$0xff]  }
  0x47   :  { %1978 = vmatprep.subr.bf16.mxu0 %v2021_v13  ;;  %v2065_v35 = vld [vmem:[#allocation7 + $0x218] sm:$0xff]   ;;  %vm2428_vm13 = vmpackc.low %vm2284_vm2, %vm1158_vm12 }
  0x48   :  { %1809 = vmatpush3.bf16.msra.mxu1 %v2033_v20  ;;  %vm2442_vm15 = vmpackc.low %vm2284_vm2, %vm1160_vm14  ;;  %v2080_v58 = vld [vmem:[#allocation7 + $0xd8] sm:$0xff]  }
  0x49   :  { %1810 = vmatprep.subr.bf16.mxu1 %v2034_v24  ;;  %v2059_v24 = vld [vmem:[#allocation7 + $0x230] sm:$0xff]  }
  0x4a   :  { %1979 = vmatpush3.bf16.msra.mxu0 %v2021_v13 }
  0x4b   :  { %1980 = vmatprep.subr.bf16.mxu0 %v2022_v15 }
  0x4c   :  { %1811 = vmatpush3.bf16.msra.mxu1 %v2035_v25 }
  0x4d   :  { %1812 = vmatprep.subr.bf16.mxu1 %v2036_v26  ;;  %v2060_v26 = vld [vmem:[#allocation7 + $0x268] sm:$0xff]  }
  0x4e   :  { %1981 = vmatpush3.bf16.msra.mxu0 %v2022_v15 }
  0x4f   :  { %1982 = vmatprep.subr.bf16.mxu0 %v2023_v19 }
  0x50   :  { %1813 = vmatpush3.bf16.msra.mxu1 %v2037_v27 }
  0x51   :  { %1814 = vmatprep.subr.bf16.mxu1 %v2038_v28 }
  0x52   :  { %1983 = vmatpush3.bf16.msra.mxu0 %v2023_v19 }
  0x53   :  { %1828 = vmatprep.subr.bf16.mxu0 %v2072_v31 }
  0x54   :  { %1815 = vmatpush3.bf16.msra.mxu1 %v2039_v29 }
  0x55   :  { %1985 = vmatmul.mubr.bf16.vlgmr.msra.gmra.mxu0 %v77_v23  ;;  %1856 = vmatprep.subr.bf16.mxu1 %v2040_v30  ;;  %v2058_v23 = vld [vmem:[#allocation7 + $0x270] sm:$0xff]   ;;  %v2061_v30 = vld [vmem:[#allocation7 + $0x228] sm:$0xff]  }
  0x56   :  { %1829 = vmatpush3.bf16.msra.mxu0 %v2073_v32  ;;  %v2062_v32 = vld [vmem:[#allocation7 + $0x260] sm:$0xff]  }
  0x57   :  { %1830 = vmatprep.subr.bf16.mxu0 %v2074_v33  ;;  %v2063_v33 = vld [vmem:[#allocation7 + $0x220] sm:$0xff]  }
  0x5a   :  { %1831 = vmatpush3.bf16.msra.mxu0 %v2075_v34  ;;  %v2064_v34 = vld [vmem:[#allocation7 + $0x258] sm:$0xff]  }
 0x115   :  { %v1986_v36 = vpop.f32.mrf.mxu0 }
 0x116   :  { %v2352_v51 = vadd.f32 %v1986_v36, %v1631_v39  ;;  %v2066_v36 = vld [vmem:[#allocation7 + $0x250] sm:$0xff]  }
 0x117   :  { %v181_v37 = vpop.f32.mrf.mxu0 }
 0x118   :  { %v2336_v42 = vadd.f32 %v1631_v39, %v181_v37  ;;  %v255_v61 = vrot.slane %v2352_v51, 7  ;;  %v710_v25 = vrot.slane %v2352_v51, 6  ;;  %v2067_v37 = vld [vmem:[#allocation7 + $0x210] sm:$0xff]   ;;  %v1164_v41 = vrot.slane %v2352_v51, 4 }
 0x119   :  { %v1987_v40 = vpop.f32.mrf.mxu0 }
 0x11a   :  { %v2338_v43 = vadd.f32 %v1987_v40, %v1631_v39  ;;  %v253_v49 = vrot.slane %v2336_v42, 7  ;;  %v708_v15 = vrot.slane %v2336_v42, 6  ;;  %v2069_v40 = vld [vmem:[#allocation7 + $0x208] sm:$0xff]  }
 0x11b   :  { %v184_v44 = vpop.f32.mrf.mxu0 }
 0x11c   :  { %v2340_v45 = vadd.f32 %v1631_v39, %v184_v44  ;;  %v256_v46 = vrot.slane %v2338_v43, 7  ;;  %v2368_v59 = vpack.c.bf16 %v2338_v43, %v2352_v51  ;;  %v711_v16 = vrot.slane %v2338_v43, 6  ;;  %v2068_v39 = vld [vmem:[#allocation7 + $0x248] sm:$0xff]   ;;  %v2070_v44 = vld [vmem:[#allocation7 + $0x240] sm:$0xff]  }
 0x11e   :  { %v2348_v48 = vpack.c.bf16 %v2340_v45, %v2336_v42  ;;  %v254_v50 = vrot.slane %v2340_v45, 7  ;;  %v261_v53 = vsel %vm257_vm1, %v256_v46, %v253_v49  ;;  %v258_v0 = vsel %vm257_vm1, %v255_v61, %v256_v46 }
 0x11f   :  { %v709_v13 = vrot.slane %v2340_v45, 6  ;;  %v716_v19 = vsel %vm712_vm6, %v711_v16, %v708_v15  ;;  %v713_v28 = vsel %vm712_vm6, %v710_v25, %v711_v16  ;;  %v1163_v46 = vrot.slane %v2340_v45, 4  ;;  %v2466_v16 = vld [vmem:[#allocation7 + $0x2e0] sm:$0xff]  }
 0x120   :  { %435 = vmatprep.mubr.bf16.mxu1 %v2348_v48  ;;  %v260_v52 = vsel %vm257_vm1, %v253_v49, %v254_v50  ;;  %v259_v63 = vsel %vm257_vm1, %v254_v50, %v255_v61  ;;  %v1165_v49 = vrot.slane %v2338_v43, 4 }
 0x121   :  { %v1658_v56 = vpack.c.bf16 %v260_v52, %v261_v53  ;;  %v1661_v3 = vpack.c.bf16 %v258_v0, %v259_v63  ;;  %v715_v18 = vsel %vm712_vm6, %v708_v15, %v709_v13  ;;  %v714_v27 = vsel %vm712_vm6, %v709_v13, %v710_v25  ;;  %v2078_v63 = vld [vmem:[#allocation7 + $0xe0] sm:$0xff]   ;;  %v2456_v13 = vld [vmem:[#allocation7 + $0x2b0] sm:$0xff]   ;;  %v2462_v15 = vld [vmem:[#allocation7 + $0x2a8] sm:$0xff]  }
 0x122   :  { %v1708_v22 = vpack.c.bf16 %v715_v18, %v716_v19  ;;  %v1711_v31 = vpack.c.bf16 %v713_v28, %v714_v27  ;;  %v1167_v61 = vsel %vm1166_vm11, %v1164_v41, %v1165_v49  ;;  %v2079_v0 = vld [vmem:[#allocation7 + $0xa0] sm:$0xff]   ;;  %v2472_v18 = vld [vmem:[#allocation7 + $0x2d8] sm:$0xff]  }
 0x123   :  { %1659 = vmatmul.mubr.msk.bf16.vlgmr.msra.gmra.mxu1 %vm2360_vm3, %v1658_v56  ;;  %v2076_v56 = vld [vmem:[#allocation7 + $0xe8] sm:$0xff]   ;;  %v2474_v19 = vld [vmem:[#allocation7 + $0x298] sm:$0xff]   ;;  %v2490_v25 = vld [vmem:[#allocation7 + $0x2c0] sm:$0xff]  }
 0x124   :  { %1857 = vmatpush3.bf16.msra.mxu1 %v2041_v55  ;;  %443 = vmatprep.mubr.bf16.mxu1 %v2368_v59 }
 0x125   :  { %1858 = vmatprep.subr.bf16.mxu1 %v2042_v57  ;;  %1832 = vmatprep.subr.bf16.mxu0 %v2076_v56  ;;  %v2077_v57 = vld [vmem:[#allocation7 + $0xa8] sm:$0xff]  }
 0x126   :  { %1833 = vmatpush3.bf16.msra.mxu0 %v2077_v57 }
 0x127   :  { %1834 = vmatprep.subr.bf16.mxu0 %v2078_v63 }
 0x128   :  { %1859 = vmatpush3.bf16.msra.mxu1 %v2043_v60  ;;  %v1168_v60 = vsel %vm1166_vm11, %v1163_v46, %v1164_v41 }
 0x129   :  { %1860 = vmatprep.subr.bf16.mxu1 %v2044_v62 }
 0x12a   :  { %1835 = vmatpush3.bf16.msra.mxu0 %v2079_v0  ;;  %v2089_v0 = vld [vmem:[#allocation7 + $0x1b8] sm:$0xff]  }
 0x12b   :  { %1662 = vmatmul.mubr.msk.bf16.gmra.mxu1 %vm2380_vm5, %v1661_v3  ;;  %1836 = vmatprep.subr.bf16.mxu0 %v2080_v58  ;;  %v2082_v3 = vld [vmem:[#allocation7 + $0xd0] sm:$0xff]  }
 0x12c   :  { %1861 = vmatpush3.bf16.msra.mxu1 %v2045_v2  ;;  %889 = vmatprep.mubr.bf16.mxu1 %v2348_v48  ;;  %v2081_v2 = vld [vmem:[#allocation7 + $0x98] sm:$0xff]  }
 0x12d   :  { %1862 = vmatprep.subr.bf16.mxu1 %v2046_v4  ;;  %v2083_v4 = vld [vmem:[#allocation7 + $0x90] sm:$0xff]  }
 0x12e   :  { %1837 = vmatpush3.bf16.msra.mxu0 %v2081_v2  ;;  %v2090_v2 = vld [vmem:[#allocation7 + $0x1f0] sm:$0xff]  }
 0x12f   :  { %1838 = vmatprep.subr.bf16.mxu0 %v2082_v3 }
 0x130   :  { %1863 = vmatpush3.bf16.msra.mxu1 %v2047_v5  ;;  %v2084_v5 = vld [vmem:[#allocation7 + $0xc8] sm:$0xff]  }
 0x131   :  { %1864 = vmatprep.subr.bf16.mxu1 %v2048_v6  ;;  %v2085_v6 = vld [vmem:[#allocation7 + $0x88] sm:$0xff]  }
 0x132   :  { %1839 = vmatpush3.bf16.msra.mxu0 %v2083_v4 }
 0x133   :  { %1840 = vmatprep.subr.bf16.mxu0 %v2084_v5  ;;  %v2091_v5 = vld [vmem:[#allocation7 + $0x1b0] sm:$0xff]  }
 0x134   :  { %1865 = vmatpush3.bf16.msra.mxu1 %v2049_v7  ;;  %v2086_v7 = vld [vmem:[#allocation7 + $0xc0] sm:$0xff]  }
 0x135   :  { %1866 = vmatprep.subr.bf16.mxu1 %v2050_v8  ;;  %v2087_v8 = vld [vmem:[#allocation7 + $0x80] sm:$0xff]  }
 0x136   :  { %1841 = vmatpush3.bf16.msra.mxu0 %v2085_v6  ;;  %v2092_v6 = vld [vmem:[#allocation7 + $0x1e8] sm:$0xff]  }
 0x137   :  { %1842 = vmatprep.subr.bf16.mxu0 %v2086_v7 }
 0x138   :  { %1867 = vmatpush3.bf16.msra.mxu1 %v2051_v9  ;;  %v2088_v9 = vld [vmem:[#allocation7 + $0x1f8] sm:$0xff]  }
 0x139   :  { %1868 = vmatprep.subr.bf16.mxu1 %v2052_v10  ;;  %v2448_v10 = vld [vmem:[#allocation7 + $0x2f8] sm:$0xff]  }
 0x13a   :  { %1843 = vmatpush3.bf16.msra.mxu0 %v2087_v8 }
 0x13b   :  { %1884 = vmatprep.subr.bf16.mxu0 %v2088_v9  ;;  %v2093_v9 = vld [vmem:[#allocation7 + $0x1a8] sm:$0xff]  }
 0x13c   :  { %1869 = vmatpush3.bf16.msra.mxu1 %v2053_v11  ;;  %v2450_v11 = vld [vmem:[#allocation7 + $0x2b8] sm:$0xff]  }
 0x13d   :  { %1870 = vmatprep.subr.bf16.mxu1 %v2054_v12  ;;  %v2453_v12 = vld [vmem:[#allocation7 + $0x2f0] sm:$0xff]  }
 0x140   :  { %1871 = vmatpush3.bf16.msra.mxu1 %v2055_v14  ;;  %v2460_v14 = vld [vmem:[#allocation7 + $0x2e8] sm:$0xff]  }
 0x141   :  { %1912 = vmatprep.subr.bf16.mxu1 %v2056_v17  ;;  %v2468_v17 = vld [vmem:[#allocation7 + $0x2a0] sm:$0xff]  }
 0x143   :  { %1709 = vmatmul.mubr.msk.bf16.vlgmr.msra.gmra.mxu1 %vm2397_vm8, %v1708_v22  ;;  %v2480_v22 = vld [vmem:[#allocation7 + $0x290] sm:$0xff]  }
 0x144   :  { %897 = vmatprep.mubr.bf16.mxu1 %v2368_v59  ;;  %1913 = vmatpush3.bf16.msra.mxu1 %v2057_v21  ;;  %v2478_v21 = vld [vmem:[#allocation7 + $0x2d0] sm:$0xff]  }
 0x145   :  { %1914 = vmatprep.subr.bf16.mxu1 %v2058_v23  ;;  %v2484_v23 = vld [vmem:[#allocation7 + $0x2c8] sm:$0xff]  }
 0x148   :  { %1915 = vmatpush3.bf16.msra.mxu1 %v2059_v24  ;;  %v2486_v24 = vld [vmem:[#allocation7 + $0x288] sm:$0xff]  }
 0x149   :  { %1916 = vmatprep.subr.bf16.mxu1 %v2060_v26  ;;  %v2492_v26 = vld [vmem:[#allocation7 + $0x280] sm:$0xff]  }
 0x14b   :  { %1712 = vmatmul.mubr.msk.bf16.gmra.mxu1 %vm2411_vm10, %v1711_v31  ;;  %v1640_v31 = vld [vmem:[#allocation8 + $0x1] ss:$0 sm:$0xff] }
 0x14c   :  { %1917 = vmatpush3.bf16.msra.mxu1 %v2061_v30  ;;  %1343 = vmatprep.mubr.bf16.mxu1 %v2348_v48  ;;  %v1162_v48 = vrot.slane %v2336_v42, 4 }
 0x14d   :  { %1918 = vmatprep.subr.bf16.mxu1 %v2062_v32 }
 0x14e   :  { %v1169_v50 = vsel %vm1166_vm11, %v1162_v48, %v1163_v46  ;;  %v1170_v52 = vsel %vm1166_vm11, %v1165_v49, %v1162_v48 }
 0x14f   :  { %v1758_v55 = vpack.c.bf16 %v1169_v50, %v1170_v52 }
 0x150   :  { %1919 = vmatpush3.bf16.msra.mxu1 %v2063_v33 }
 0x151   :  { %1920 = vmatprep.subr.bf16.mxu1 %v2064_v34 }
 0x154   :  { %1921 = vmatpush3.bf16.msra.mxu1 %v2065_v35 }
 0x155   :  { %1922 = vmatprep.subr.bf16.mxu1 %v2066_v36 }
 0x158   :  { %1923 = vmatpush3.bf16.msra.mxu1 %v2067_v37 }
 0x159   :  { %1924 = vmatprep.subr.bf16.mxu1 %v2068_v39 }
 0x15c   :  { %1925 = vmatpush3.bf16.msra.mxu1 %v2069_v40 }
 0x15d   :  { %1926 = vmatprep.subr.bf16.mxu1 %v2070_v44 }
 0x160   :  { %1927 = vmatpush3.bf16.msra.mxu1 %v2071_v47 }
 0x161   :  { %1988 = vmatprep.subr.bf16.mxu1 %v2448_v10 }
 0x163   :  { %1759 = vmatmul.mubr.msk.bf16.vlgmr.msra.gmra.mxu1 %vm2428_vm13, %v1758_v55 }
 0x164   :  { %1351 = vmatprep.mubr.bf16.mxu1 %v2368_v59  ;;  %v1761_v59 = vpack.c.bf16 %v1167_v61, %v1168_v60  ;;  %1996 = vmatpush3.bf16.msra.mxu1 %v2450_v11 }
 0x165   :  { %1989 = vmatprep.subr.bf16.mxu1 %v2453_v12 }
 0x168   :  { %1997 = vmatpush3.bf16.msra.mxu1 %v2456_v13 }
 0x169   :  { %1990 = vmatprep.subr.bf16.mxu1 %v2460_v14 }
 0x16b   :  { %1762 = vmatmul.mubr.msk.bf16.gmra.mxu1 %vm2442_vm15, %v1761_v59 }
 0x16c   :  { %1998 = vmatpush3.bf16.msra.mxu1 %v2462_v15 }
 0x16d   :  { %1991 = vmatprep.subr.bf16.mxu1 %v2466_v16 }
 0x170   :  { %1999 = vmatpush3.bf16.msra.mxu1 %v2468_v17 }
 0x171   :  { %1992 = vmatprep.subr.bf16.mxu1 %v2472_v18 }
 0x174   :  { %2000 = vmatpush3.bf16.msra.mxu1 %v2474_v19 }
 0x175   :  { %1993 = vmatprep.subr.bf16.mxu1 %v2478_v21 }
 0x178   :  { %2001 = vmatpush3.bf16.msra.mxu1 %v2480_v22 }
 0x179   :  { %1994 = vmatprep.subr.bf16.mxu1 %v2484_v23 }
 0x17c   :  { %2002 = vmatpush3.bf16.msra.mxu1 %v2486_v24 }
 0x17d   :  { %1995 = vmatprep.subr.bf16.mxu1 %v2490_v25 }
 0x180   :  { %2003 = vmatpush3.bf16.msra.mxu1 %v2492_v26 }
 0x1e3   :  { %v1816_v27 = vpop.f32.mrf.mxu1 }
 0x1e5   :  { %v1817_v28 = vpop.f32.mrf.mxu1 }
 0x1e6   :  { %v1818_v30 = vadd.f32 %v1817_v28, %v1816_v27 }
 0x1e7   :  { %v1819_v32 = vpop.f32.mrf.mxu1 }
 0x1e8   :  { %v438_v34 = vadd.f32 %v1818_v30, %v1640_v31  ;;  %v2094_v30 = vld [vmem:[#allocation7 + $0x1e0] sm:$0xff]  }
 0x1e9   :  { %v1820_v33 = vpop.f32.mrf.mxu1 }
 0x1ea   :  { %v1821_v35 = vadd.f32 %v1820_v33, %v1819_v32  ;;  %v452_v40 = vmax.f32 %v438_v34, 0.0  ;;  %v2095_v32 = vld [vmem:[#allocation7 + $0x1a0] sm:$0xff]  }
 0x1eb   :  { %v1822_v36 = vpop.f32.mrf.mxu1  ;;  %v1690_v33 = vld [vmem:[#allocation8 + $0x3] ss:$0 sm:$0xff] }
 0x1ec   :  { %v441_v37 = vadd.f32 %v1821_v35, %v1640_v31  ;;  %v456_v57 = vrot.slane %v452_v40, 7  ;;  %v2096_v35 = vld [vmem:[#allocation7 + $0x1d8] sm:$0xff]  }
 0x1ed   :  { %v1823_v39 = vpop.f32.mrf.mxu1 }
 0x1ee   :  { %v453_v44 = vmax.f32 %v441_v37, 0.0  ;;  %v1824_v49 = vadd.f32 %v1823_v39, %v1822_v36 }
 0x1ef   :  { %v1825_v46 = vpop.f32.mrf.mxu1 }
 0x1f0   :  { %v469_v47 = vpack.c.bf16 %v453_v44, %v452_v40  ;;  %v457_v55 = vrot.slane %v453_v44, 7  ;;  %v446_v56 = vadd.f32 %v1824_v49, %v1640_v31  ;;  %v2097_v40 = vld [vmem:[#allocation7 + $0x198] sm:$0xff]  }
 0x1f1   :  { %v1826_v48 = vpop.f32.mrf.mxu1 }
 0x1f2   :  { %v1827_v50 = vadd.f32 %v1826_v48, %v1825_v46  ;;  %638 = vmatprep.mubr.bf16.mxu0 %v469_v47  ;;  %v462_v61 = vsel %vm257_vm1, %v456_v57, %v457_v55  ;;  %v454_v63 = vmax.f32 %v446_v56, 0.0  ;;  %v2098_v46 = vld [vmem:[#allocation7 + $0x1d0] sm:$0xff]  }
 0x1f4   :  { %v449_v52 = vadd.f32 %v1827_v50, %v1640_v31  ;;  %v458_v4 = vrot.slane %v454_v63, 7  ;;  %v2099_v50 = vld [vmem:[#allocation7 + $0x190] sm:$0xff]  }
 0x1f6   :  { %v455_v41 = vmax.f32 %v449_v52, 0.0  ;;  %v461_v8 = vsel %vm257_vm1, %v457_v55, %v458_v4  ;;  %v2100_v55 = vld [vmem:[#allocation7 + $0x1c8] sm:$0xff]  }
 0x1f8   :  { %v459_v60 = vrot.slane %v455_v41, 7  ;;  %v471_v3 = vpack.c.bf16 %v455_v41, %v454_v63  ;;  %v2102_v63 = vld [vmem:[#allocation7 + $0x1c0] sm:$0xff]  }
 0x1fa   :  { %v463_v59 = vsel %vm257_vm1, %v459_v60, %v456_v57  ;;  %v460_v7 = vsel %vm257_vm1, %v458_v4, %v459_v60 }
 0x1fb   :  { %v1681_v58 = vpack.c.bf16 %v462_v61, %v463_v59  ;;  %v1684_v28 = vpack.c.bf16 %v460_v7, %v461_v8  ;;  %v2101_v61 = vld [vmem:[#allocation7 + $0x188] sm:$0xff]  }
 0x1fd   :  { %1682 = vmatmul.mubr.msk.bf16.vlgmr.msra.gmra.mxu0 %vm2360_vm3, %v1681_v58 }
 0x1fe   :  { %1885 = vmatpush3.bf16.msra.mxu0 %v2089_v0  ;;  %646 = vmatprep.mubr.bf16.mxu0 %v471_v3  ;;  %v2103_v3 = vld [vmem:[#allocation7 + $0x180] sm:$0xff]  }
 0x1ff   :  { %1886 = vmatprep.subr.bf16.mxu0 %v2090_v2 }
 0x202   :  { %1887 = vmatpush3.bf16.msra.mxu0 %v2091_v5 }
 0x203   :  { %v1872_v27 = vpop.f32.mrf.mxu1  ;;  %1888 = vmatprep.subr.bf16.mxu0 %v2092_v6 }
 0x205   :  { %v1873_v54 = vpop.f32.mrf.mxu1  ;;  %1685 = vmatmul.mubr.msk.bf16.gmra.mxu0 %vm2380_vm5, %v1684_v28 }
 0x206   :  { %v1874_v31 = vadd.f32 %v1873_v54, %v1872_v27  ;;  %1889 = vmatpush3.bf16.msra.mxu0 %v2093_v9 }
 0x207   :  { %v1875_v34 = vpop.f32.mrf.mxu1  ;;  %1890 = vmatprep.subr.bf16.mxu0 %v2094_v30 }
 0x208   :  { %v892_v37 = vadd.f32 %v1874_v31, %v1690_v33 }
 0x209   :  { %v1876_v36 = vpop.f32.mrf.mxu1 }
 0x20a   :  { %v1877_v39 = vadd.f32 %v1876_v36, %v1875_v34  ;;  %1891 = vmatpush3.bf16.msra.mxu0 %v2095_v32  ;;  %v906_v49 = vmax.f32 %v892_v37, 0.0 }
 0x20b   :  { %v1878_v44 = vpop.f32.mrf.mxu1  ;;  %1892 = vmatprep.subr.bf16.mxu0 %v2096_v35 }
 0x20c   :  { %v895_v47 = vadd.f32 %v1877_v39, %v1690_v33  ;;  %v910_v4 = vrot.slane %v906_v49, 6 }
 0x20d   :  { %v1879_v48 = vpop.f32.mrf.mxu1 }
 0x20e   :  { %v907_v1 = vmax.f32 %v895_v47, 0.0  ;;  %1893 = vmatpush3.bf16.msra.mxu0 %v2097_v40  ;;  %v1880_v57 = vadd.f32 %v1879_v48, %v1878_v44 }
 0x20f   :  { %v1881_v52 = vpop.f32.mrf.mxu1  ;;  %1894 = vmatprep.subr.bf16.mxu0 %v2098_v46 }
 0x210   :  { %v923_v56 = vpack.c.bf16 %v907_v1, %v906_v49  ;;  %v911_v0 = vrot.slane %v907_v1, 6  ;;  %v900_v58 = vadd.f32 %v1880_v57, %v1690_v33 }
 0x211   :  { %v1882_v41 = vpop.f32.mrf.mxu1 }
 0x212   :  { %v1883_v60 = vadd.f32 %v1882_v41, %v1881_v52  ;;  %1895 = vmatpush3.bf16.msra.mxu0 %v2099_v50  ;;  %1092 = vmatprep.mubr.bf16.mxu0 %v923_v56  ;;  %v916_v6 = vsel %vm712_vm6, %v910_v4, %v911_v0  ;;  %v908_v7 = vmax.f32 %v900_v58, 0.0  ;;  %v1663_v56 = vld [vmem:[#allocation8 + $0x2] ss:$0 sm:$0xff] }
 0x213   :  { %1896 = vmatprep.subr.bf16.mxu0 %v2100_v55 }
 0x214   :  { %v903_v59 = vadd.f32 %v1883_v60, %v1690_v33  ;;  %v912_v28 = vrot.slane %v908_v7, 6 }
 0x216   :  { %v909_v2 = vmax.f32 %v903_v59, 0.0  ;;  %1897 = vmatpush3.bf16.msra.mxu0 %v2101_v61  ;;  %v915_v54 = vsel %vm712_vm6, %v911_v0, %v912_v28 }
 0x217   :  { %1898 = vmatprep.subr.bf16.mxu0 %v2102_v63 }
 0x218   :  { %v913_v5 = vrot.slane %v909_v2, 6  ;;  %v925_v27 = vpack.c.bf16 %v909_v2, %v908_v7 }
 0x21a   :  { %v917_v8 = vsel %vm712_vm6, %v913_v5, %v910_v4  ;;  %1899 = vmatpush3.bf16.msra.mxu0 %v2103_v3  ;;  %v914_v30 = vsel %vm712_vm6, %v912_v28, %v913_v5 }
 0x21b   :  { %v1731_v9 = vpack.c.bf16 %v916_v6, %v917_v8  ;;  %1940 = vmatprep.subr.bf16.mxu0 %v2448_v10  ;;  %v1734_v10 = vpack.c.bf16 %v914_v30, %v915_v54 }
 0x21d   :  { %1732 = vmatmul.mubr.msk.bf16.vlgmr.msra.gmra.mxu0 %vm2397_vm8, %v1731_v9 }
 0x21e   :  { %1100 = vmatprep.mubr.bf16.mxu0 %v925_v27  ;;  %1941 = vmatpush3.bf16.msra.mxu0 %v2450_v11  ;;  %v1740_v11 = vld [vmem:[#allocation8 + $0x5] ss:$0 sm:$0xff] }
 0x21f   :  { %1942 = vmatprep.subr.bf16.mxu0 %v2453_v12 }
 0x222   :  { %1943 = vmatpush3.bf16.msra.mxu0 %v2456_v13 }
 0x223   :  { %v1928_v31 = vpop.f32.mrf.mxu1  ;;  %1944 = vmatprep.subr.bf16.mxu0 %v2460_v14 }
 0x225   :  { %1735 = vmatmul.mubr.msk.bf16.gmra.mxu0 %vm2411_vm10, %v1734_v10  ;;  %v1929_v20 = vpop.f32.mrf.mxu1 }
 0x226   :  { %v1930_v32 = vadd.f32 %v1929_v20, %v1928_v31  ;;  %1945 = vmatpush3.bf16.msra.mxu0 %v2462_v15 }
 0x227   :  { %v1931_v12 = vpop.f32.mrf.mxu1  ;;  %1946 = vmatprep.subr.bf16.mxu0 %v2466_v16 }
 0x228   :  { %v1346_v13 = vadd.f32 %v1930_v32, %v1740_v11 }
 0x229   :  { %v1932_v33 = vpop.f32.mrf.mxu1 }
 0x22a   :  { %v1933_v34 = vadd.f32 %v1932_v33, %v1931_v12  ;;  %1947 = vmatpush3.bf16.msra.mxu0 %v2468_v17  ;;  %v1360_v29 = vmax.f32 %v1346_v13, 0.0  ;;  %v1713_v33 = vld [vmem:[#allocation8 + $0x4] ss:$0 sm:$0xff] }
 0x22b   :  { %v1934_v35 = vpop.f32.mrf.mxu1  ;;  %1948 = vmatprep.subr.bf16.mxu0 %v2472_v18 }
 0x22c   :  { %v1349_v14 = vadd.f32 %v1933_v34, %v1740_v11 }
 0x22d   :  { %v1935_v36 = vpop.f32.mrf.mxu1 }
 0x22e   :  { %v1361_v37 = vmax.f32 %v1349_v14, 0.0  ;;  %v1936_v39 = vadd.f32 %v1935_v36, %v1934_v35  ;;  %1949 = vmatpush3.bf16.msra.mxu0 %v2474_v19  ;;  %v1364_v19 = vrot.slane %v1360_v29, 4 }
 0x22f   :  { %v1937_v15 = vpop.f32.mrf.mxu1  ;;  %1950 = vmatprep.subr.bf16.mxu0 %v2478_v21 }
 0x230   :  { %v1354_v40 = vadd.f32 %v1936_v39, %v1740_v11  ;;  %v1377_v16 = vpack.c.bf16 %v1361_v37, %v1360_v29  ;;  %v1365_v18 = vrot.slane %v1361_v37, 4 }
 0x231   :  { %v1938_v44 = vpop.f32.mrf.mxu1 }
 0x232   :  { %v1362_v46 = vmax.f32 %v1354_v40, 0.0  ;;  %v1939_v47 = vadd.f32 %v1938_v44, %v1937_v15  ;;  %1951 = vmatpush3.bf16.msra.mxu0 %v2480_v22  ;;  %1546 = vmatprep.mubr.bf16.mxu0 %v1377_v16  ;;  %v1370_v50 = vsel %vm1166_vm11, %v1364_v19, %v1365_v18 }
 0x233   :  { %1952 = vmatprep.subr.bf16.mxu0 %v2484_v23 }
 0x234   :  { %v1357_v17 = vadd.f32 %v1939_v47, %v1740_v11  ;;  %v1366_v48 = vrot.slane %v1362_v46, 4 }
 0x236   :  { %v1363_v49 = vmax.f32 %v1357_v17, 0.0  ;;  %1953 = vmatpush3.bf16.msra.mxu0 %v2486_v24  ;;  %v1369_v22 = vsel %vm1166_vm11, %v1365_v18, %v1366_v48 }
 0x237   :  { %1954 = vmatprep.subr.bf16.mxu0 %v2490_v25 }
 0x238   :  { %v1367_v21 = vrot.slane %v1363_v49, 4  ;;  %v1379_v1 = vpack.c.bf16 %v1363_v49, %v1362_v46 }
 0x23a   :  { %v1368_v23 = vsel %vm1166_vm11, %v1366_v48, %v1367_v21  ;;  %v1371_v52 = vsel %vm1166_vm11, %v1367_v21, %v1364_v19  ;;  %1955 = vmatpush3.bf16.msra.mxu0 %v2492_v26  ;;  %1554 = vmatprep.mubr.bf16.mxu1 %v1379_v1 }
 0x23b   :  { %v1781_v24 = vpack.c.bf16 %v1370_v50, %v1371_v52  ;;  %v1784_v55 = vpack.c.bf16 %v1368_v23, %v1369_v22 }
 0x23d   :  { %1782 = vmatmul.mubr.msk.bf16.vlgmr.msra.gmra.mxu0 %vm2428_vm13, %v1781_v24  ;;  %1785 = vmatmul.mubr.msk.bf16.vlgmr.msra.gmra.mxu1 %vm2442_vm15, %v1784_v55 }
 0x2bd   :  { %v1844_v25 = vpop.f32.mrf.mxu0 }
 0x2bf   :  { %v1845_v41 = vpop.f32.mrf.mxu0 }
 0x2c0   :  { %v1846_v57 = vadd.f32 %v1845_v41, %v1844_v25 }
 0x2c1   :  { %v1847_v60 = vpop.f32.mrf.mxu0 }
 0x2c2   :  { %v641_v61 = vadd.f32 %v1846_v57, %v1663_v56 }
 0x2c3   :  { %v1848_v63 = vpop.f32.mrf.mxu0 }
 0x2c4   :  { %v655_v38 = vmax.f32 %v641_v61, 0.0  ;;  %v1849_v59 = vadd.f32 %v1848_v63, %v1847_v60 }
 0x2c5   :  { %v1850_v0 = vpop.f32.mrf.mxu0 }
 0x2c6   :  { %v1686_v26 = vmul.f32 -1.442695, %v655_v38  ;;  %v644_v58 = vadd.f32 %v1849_v59, %v1663_v56 }
 0x2c7   :  { %v1851_v2 = vpop.f32.mrf.mxu0 }
 0x2c8   :  { %2120 = vpow2.f32 %v1686_v26  ;;  %v656_v3 = vmax.f32 %v644_v58, 0.0  ;;  %v1852_v53 = vadd.f32 %v1851_v2, %v1850_v0 }
 0x2c9   :  { %v1853_v4 = vpop.f32.mrf.mxu0 }
 0x2ca   :  { %v1687_v5 = vmul.f32 -1.442695, %v656_v3  ;;  %v649_v62 = vadd.f32 %v1852_v53, %v1663_v56 }
 0x2cb   :  { %v1854_v6 = vpop.f32.mrf.mxu0 }
 0x2cc   :  { %2122 = vpow2.f32 %v1687_v5  ;;  %v657_v7 = vmax.f32 %v649_v62, 0.0  ;;  %v1855_v8 = vadd.f32 %v1854_v6, %v1853_v4 }
 0x2ce   :  { %v1688_v9 = vmul.f32 -1.442695, %v657_v7  ;;  %v652_v27 = vadd.f32 %v1855_v8, %v1663_v56 }
 0x2d0   :  { %2124 = vpow2.f32 %v1688_v9  ;;  %v658_v28 = vmax.f32 %v652_v27, 0.0 }
 0x2d2   :  { %v1689_v30 = vmul.f32 -1.442695, %v658_v28 }
 0x2d4   :  { %2126 = vpow2.f32 %v1689_v30 }
 0x2d5   :  { %v2121_v54 = vpop.eup %2120 }
 0x2d6   :  { %v671_v31 = vadd.f32 1.0, %v2121_v54 }
 0x2d8   :  { %2128 = vrcp.f32 %v671_v31  ;;  %v1763_v31 = vld [vmem:[#allocation8 + $0x6] ss:$0 sm:$0xff] }
 0x2d9   :  { %v2123_v10 = vpop.eup %2122 }
 0x2da   :  { %v672_v20 = vadd.f32 1.0, %v2123_v10 }
 0x2dc   :  { %2130 = vrcp.f32 %v672_v20 }
 0x2dd   :  { %v2125_v32 = vpop.eup %2124  ;;  %v1900_v11 = vpop.f32.mrf.mxu0 }
 0x2de   :  { %v673_v12 = vadd.f32 1.0, %v2125_v32 }
 0x2df   :  { %v1901_v13 = vpop.f32.mrf.mxu0 }
 0x2e0   :  { %v1902_v34 = vadd.f32 %v1901_v13, %v1900_v11  ;;  %2132 = vrcp.f32 %v673_v12 }
 0x2e1   :  { %v2127_v35 = vpop.eup %2126  ;;  %v1903_v14 = vpop.f32.mrf.mxu0 }
 0x2e2   :  { %v674_v36 = vadd.f32 1.0, %v2127_v35  ;;  %v1095_v29 = vadd.f32 %v1902_v34, %v1713_v33 }
 0x2e3   :  { %v1904_v37 = vpop.f32.mrf.mxu0 }
 0x2e4   :  { %2134 = vrcp.f32 %v674_v36  ;;  %v1109_v39 = vmax.f32 %v1095_v29, 0.0  ;;  %v1905_v15 = vadd.f32 %v1904_v37, %v1903_v14 }
 0x2e5   :  { %v1906_v40 = vpop.f32.mrf.mxu0  ;;  %v2129_v46 = vpop.eup %2128 }
 0x2e6   :  { %v1736_v16 = vmul.f32 -1.442695, %v1109_v39  ;;  %v1098_v44 = vadd.f32 %v1905_v15, %v1713_v33  ;;  %v683_v19 = vmul.f32 %v2129_v46, %v2336_v42 }
 0x2e7   :  { %v1907_v47 = vpop.f32.mrf.mxu0 }
 0x2e8   :  { %2136 = vpow2.f32 %v1736_v16  ;;  %v1110_v17 = vmax.f32 %v1098_v44, 0.0  ;;  %v1908_v18 = vadd.f32 %v1907_v47, %v1906_v40 }
 0x2e9   :  { %v2131_v48 = vpop.eup %2130  ;;  %v1909_v49 = vpop.f32.mrf.mxu0 }
 0x2ea   :  { %v684_v21 = vmul.f32 %v2131_v48, %v2340_v45  ;;  %v1737_v1 = vmul.f32 -1.442695, %v1110_v17  ;;  %v1103_v50 = vadd.f32 %v1908_v18, %v1713_v33 }
 0x2eb   :  { %v1910_v22 = vpop.f32.mrf.mxu0 }
 0x2ec   :  { %2138 = vpow2.f32 %v1737_v1  ;;  %v1111_v23 = vmax.f32 %v1103_v50, 0.0  ;;  %v1911_v52 = vadd.f32 %v1910_v22, %v1909_v49  ;;  %v687_v24 = vadd.f32 %v684_v21, %v683_v19 }
 0x2ed   :  { %v2133_v41 = vpop.eup %2132 }
 0x2ee   :  { %v1738_v55 = vmul.f32 -1.442695, %v1111_v23  ;;  %v1106_v25 = vadd.f32 %v1911_v52, %v1713_v33  ;;  %v688_v56 = vrot.slane %v687_v24, 4  ;;  %v685_v63 = vmul.f32 %v2133_v41, %v2352_v51 }
 0x2f0   :  { %2140 = vpow2.f32 %v1738_v55  ;;  %v1112_v57 = vmax.f32 %v1106_v25, 0.0  ;;  %v689_v60 = vadd.f32 %v688_v56, %v687_v24 }
 0x2f1   :  { %v2135_v61 = vpop.eup %2134 }
 0x2f2   :  { %v686_v38 = vmul.f32 %v2135_v61, %v2338_v43  ;;  %v1739_v59 = vmul.f32 -1.442695, %v1112_v57  ;;  %v690_v0 = vrot.slane %v689_v60, 2 }
 0x2f4   :  { %2142 = vpow2.f32 %v1739_v59  ;;  %v694_v26 = vadd.f32 %v686_v38, %v685_v63  ;;  %v691_v53 = vadd.f32 %v690_v0, %v689_v60 }
 0x2f5   :  { %v2137_v58 = vpop.eup %2136 }
 0x2f6   :  { %v1125_v2 = vadd.f32 1.0, %v2137_v58  ;;  %v695_v3 = vrot.slane %v694_v26, 4  ;;  %v692_v7 = vrot.slane %v691_v53, 1 }
 0x2f8   :  { %v696_v4 = vadd.f32 %v695_v3, %v694_v26  ;;  %2144 = vrcp.f32 %v1125_v2  ;;  %v693_v12 = vadd.f32 %v692_v7, %v691_v53 }
 0x2f9   :  { %v2139_v5 = vpop.eup %2138 }
 0x2fa   :  { %v1126_v62 = vadd.f32 1.0, %v2139_v5  ;;  %v697_v6 = vrot.slane %v696_v4, 2 }
 0x2fc   :  { %2146 = vrcp.f32 %v1126_v62  ;;  %v698_v8 = vadd.f32 %v697_v6, %v696_v4 }
 0x2fd   :  { %v2141_v9 = vpop.eup %2140  ;;  %v1956_v27 = vpop.f32.mrf.mxu0 }
 0x2fe   :  { %v1962_v28 = vpop.f32.mrf.mxu1  ;;  %v1127_v30 = vadd.f32 1.0, %v2141_v9  ;;  %v699_v54 = vrot.slane %v698_v8, 1 }
 0x2ff   :  { %v1957_v10 = vpop.f32.mrf.mxu0 }
 0x300   :  { %v1963_v20 = vpop.f32.mrf.mxu1  ;;  %v1958_v32 = vadd.f32 %v1957_v10, %v1956_v27  ;;  %v700_v33 = vadd.f32 %v699_v54, %v698_v8  ;;  %2148 = vrcp.f32 %v1127_v30 }
 0x301   :  { %v1964_v11 = vadd.f32 %v1963_v20, %v1962_v28  ;;  %v2143_v13 = vpop.eup %2142  ;;  %v1959_v34 = vpop.f32.mrf.mxu0 }
 0x302   :  { %v1965_v35 = vpop.f32.mrf.mxu1  ;;  %v1128_v14 = vadd.f32 1.0, %v2143_v13  ;;  %v1549_v36 = vadd.f32 %v1958_v32, %v1763_v31  ;;  %v702_v37 = vsel %vm701_vm0, %v693_v12, %v700_v33 }
 0x303   :  { %v1557_v29 = vadd.f32 %v1964_v11, %v1763_v31  ;;  %v1960_v39 = vpop.f32.mrf.mxu0  ;;  %703 = vst [vmem:[#allocation10] sm:$0x3] %v702_v37 }
 0x304   :  { %v1966_v15 = vpop.f32.mrf.mxu1  ;;  %2150 = vrcp.f32 %v1128_v14  ;;  %v1563_v40 = vmax.f32 %v1549_v36, 0.0  ;;  %v1961_v44 = vadd.f32 %v1960_v39, %v1959_v34 }
 0x305   :  { %v1565_v16 = vmax.f32 %v1557_v29, 0.0  ;;  %v1967_v46 = vadd.f32 %v1966_v15, %v1965_v35  ;;  %v2145_v48 = vpop.eup %2144 }
 0x306   :  { %v1786_v47 = vmul.f32 -1.442695, %v1563_v40  ;;  %v1552_v18 = vadd.f32 %v1961_v44, %v1763_v31  ;;  %v1137_v50 = vmul.f32 %v2145_v48, %v2336_v42 }
 0x307   :  { %v1788_v17 = vmul.f32 -1.442695, %v1565_v16  ;;  %v1560_v49 = vadd.f32 %v1967_v46, %v1763_v31 }
 0x308   :  { %2152 = vpow2.f32 %v1786_v47  ;;  %v1564_v19 = vmax.f32 %v1552_v18, 0.0 }
 0x309   :  { %v2147_v21 = vpop.eup %2146  ;;  %2154 = vpow2.f32 %v1788_v17  ;;  %v1566_v1 = vmax.f32 %v1560_v49, 0.0 }
 0x30a   :  { %v1138_v22 = vmul.f32 %v2147_v21, %v2340_v45  ;;  %v1787_v23 = vmul.f32 -1.442695, %v1564_v19 }
 0x30b   :  { %v1789_v52 = vmul.f32 -1.442695, %v1566_v1 }
 0x30c   :  { %2156 = vpow2.f32 %v1787_v23  ;;  %v1141_v24 = vadd.f32 %v1138_v22, %v1137_v50 }
 0x30d   :  { %2158 = vpow2.f32 %v1789_v52  ;;  %v2149_v55 = vpop.eup %2148 }
 0x30e   :  { %v1142_v25 = vrot.slane %v1141_v24, 4  ;;  %v1139_v57 = vmul.f32 %v2149_v55, %v2352_v51 }
 0x310   :  { %v1143_v56 = vadd.f32 %v1142_v25, %v1141_v24 }
 0x311   :  { %v2151_v41 = vpop.eup %2150 }
 0x312   :  { %v1140_v60 = vmul.f32 %v2151_v41, %v2338_v43  ;;  %v1144_v61 = vrot.slane %v1143_v56, 2 }
 0x314   :  { %v1148_v63 = vadd.f32 %v1140_v60, %v1139_v57  ;;  %v1145_v2 = vadd.f32 %v1144_v61, %v1143_v56 }
 0x315   :  { %v2153_v38 = vpop.eup %2152 }
 0x316   :  { %v2155_v59 = vpop.eup %2154  ;;  %v1579_v0 = vadd.f32 1.0, %v2153_v38  ;;  %v1149_v26 = vrot.slane %v1148_v63, 4  ;;  %v1146_v7 = vrot.slane %v1145_v2, 1 }
 0x317   :  { %v1581_v58 = vadd.f32 1.0, %v2155_v59 }
 0x318   :  { %v1150_v3 = vadd.f32 %v1149_v26, %v1148_v63  ;;  %2160 = vrcp.f32 %v1579_v0  ;;  %v1147_v27 = vadd.f32 %v1146_v7, %v1145_v2 }
 0x319   :  { %v2157_v53 = vpop.eup %2156  ;;  %2162 = vrcp.f32 %v1581_v58 }
 0x31a   :  { %v2159_v4 = vpop.eup %2158  ;;  %v1580_v5 = vadd.f32 1.0, %v2157_v53  ;;  %v1151_v62 = vrot.slane %v1150_v3, 2 }
 0x31b   :  { %v1582_v6 = vadd.f32 1.0, %v2159_v4 }
 0x31c   :  { %2164 = vrcp.f32 %v1580_v5  ;;  %v1152_v8 = vadd.f32 %v1151_v62, %v1150_v3 }
 0x31d   :  { %2166 = vrcp.f32 %v1582_v6 }
 0x31e   :  { %v1153_v9 = vrot.slane %v1152_v8, 1 }
 0x320   :  { %v1154_v28 = vadd.f32 %v1153_v9, %v1152_v8 }
 0x322   :  { %v1155_v30 = vsel %vm701_vm0, %v1147_v27, %v1154_v28 }
 0x323   :  { %1157 = vst [vmem:[#allocation10 + $0x2] sm:$0x3] %v1155_v30 }
 0x325   :  { %v2161_v54 = vpop.eup %2160 }
 0x326   :  { %v2163_v31 = vpop.eup %2162  ;;  %v1591_v32 = vmul.f32 %v2161_v54, %v2336_v42 }
 0x327   :  { %v1593_v12 = vmul.f32 %v2163_v31, %v2352_v51 }
 0x329   :  { %v2165_v10 = vpop.eup %2164 }
 0x32a   :  { %v2167_v20 = vpop.eup %2166  ;;  %v1592_v11 = vmul.f32 %v2165_v10, %v2340_v45 }
 0x32b   :  { %v1594_v33 = vmul.f32 %v2167_v20, %v2338_v43 }
 0x32c   :  { %v1595_v13 = vadd.f32 %v1592_v11, %v1591_v32 }
 0x32d   :  { %v1602_v34 = vadd.f32 %v1594_v33, %v1593_v12 }
 0x32e   :  { %v1596_v35 = vrot.slane %v1595_v13, 4 }
 0x32f   :  { %v1603_v14 = vrot.slane %v1602_v34, 4 }
 0x330   :  { %v1597_v36 = vadd.f32 %v1596_v35, %v1595_v13 }
 0x331   :  { %v1604_v29 = vadd.f32 %v1603_v14, %v1602_v34 }
 0x332   :  { %v1598_v37 = vrot.slane %v1597_v36, 2 }
 0x333   :  { %v1605_v39 = vrot.slane %v1604_v29, 2 }
 0x334   :  { %v1599_v15 = vadd.f32 %v1598_v37, %v1597_v36 }
 0x335   :  { %v1606_v40 = vadd.f32 %v1605_v39, %v1604_v29 }
 0x336   :  { %v1600_v16 = vrot.slane %v1599_v15, 1 }
 0x337   :  { %v1607_v42 = vrot.slane %v1606_v40, 1 }
 0x338   :  { %v1601_v44 = vadd.f32 %v1600_v16, %v1599_v15 }
 0x339   :  { %v1608_v45 = vadd.f32 %v1607_v42, %v1606_v40 }
 0x33b   :  { %v1609_v51 = vsel %vm701_vm0, %v1601_v44, %v1608_v45 }
 0x33c   :  { %1611 = vst [vmem:[#allocation10 + $0x4] sm:$0x3] %v1609_v51 }
 0x33d   :  { %2259 = shalt.err (!%p2256_p10)
}
 0x33e   :  { %s2286_s12 = smov 32   ;;  %s2287_s13 = smov 2  }
 0x33f   :  { %1623 = dma.vmem_to_hbm [thread:$0]  %s1618_s3, 96, %s2570_s4, [#allocation4], %s2286_s12, %s2286_s12, %s2287_s13  }
 0x340   :  { %2274 = dma.done.wait [#allocation4], 96  }
 0x341   :  { %2275 = vsyncadd [#allocation4], 4294967200 }
 0x342   :  { %1627 = vsyncpa [#allocation3], 1 }
 0x343   :  { %1628 = vsyncpa [#allocation6], 1 }
 0x344   :  { %1629 = vsyncpa [#allocation9], 1 }
 0x345   :  { %1630 = vsyncpa [#allocation4], 1 }

</bundles_post_ra>
